<compile_context>
chip_gen: v6e
topology: v6e:2x2x1
jax: 0.10.0
libtpu: 0.0.40
codegen_flags: <defaults>
</compile_context>

<pallas_src>
import functools

import jax
import jax.numpy as jnp
from jax.experimental import pallas as pl
from jax.experimental.pallas import tpu as pltpu


def _round_up(x, m):
    return ((x + m - 1) // m) * m


def _valid(mask):
    """Boolean validity from a bool or numeric 0/1 mask (no NaN propagation)."""
    if mask.dtype == jnp.bool_:
        return mask
    return mask != 0


def _vec_smooth_ap_kernel(
    n_total_ref,   # (1,)      f32 SMEM : n_total_positive_pairs
    side_ref,      # (bn, 5)   f32 VMEM : [anchor, bcf_pos, bcf_neg, scf_pos, scf_neg]
    pos_sim_ref,   # (bn, P)   native dtype : non_anchor_pos_similarities
    neg_sim_ref,   # (bn, Q)   native dtype : non_anchor_neg_similarities
    pos_mask_ref,  # (bn, P)   bool/num : valid_nonanchor_pos_pair_mask
    neg_mask_ref,  # (bn, Q)   bool/num : valid_nonanchor_neg_pair_mask
    out_ref,       # (bn, 5)   f32 out : [aps, numerator, denominator,
                   #                      n_valid_pos, n_valid_neg]
    *,
    half_inv_temp,
):
    f32 = jnp.float32

    side = side_ref[...].astype(f32)                    # (bn, 5)
    anchor = side[:, 0:1]
    bcf_pos = side[:, 1:2]
    bcf_neg = side[:, 2:3]
    scf_pos = side[:, 3:4]
    scf_neg = side[:, 4:5]

    pos_valid = _valid(pos_mask_ref[...])               # (bn, P) bool
    neg_valid = _valid(neg_mask_ref[...])               # (bn, Q) bool

    # Cast after the load (VPU cast is ~free); all math in f32.
    pos = pos_sim_ref[...].astype(f32)
    neg = neg_sim_ref[...].astype(f32)

    # sigmoid(z) == 0.5*tanh(z/2) + 0.5  -> one EUP push per element.
    # The "+0.5" affine is folded into the row sums via the valid-pair count.
    pos_t = jnp.where(pos_valid, jnp.tanh((pos - anchor) * half_inv_temp), 0.0)
    neg_t = jnp.where(neg_valid, jnp.tanh((neg - anchor) * half_inv_temp), 0.0)

    n_valid_pos = jnp.sum(pos_valid.astype(f32), axis=-1, keepdims=True)
    n_valid_neg = jnp.sum(neg_valid.astype(f32), axis=-1, keepdims=True)

    # masked_sum(sigmoid) = 0.5 * masked_sum(tanh) + 0.5 * mask_count
    pos_sum = 0.5 * jnp.sum(pos_t, axis=-1, keepdims=True) + 0.5 * n_valid_pos
    neg_sum = 0.5 * jnp.sum(neg_t, axis=-1, keepdims=True) + 0.5 * n_valid_neg

    base = 1.0 / (n_total_ref[0] - 1.0)                  # scalar from SMEM

    numerator = base + bcf_pos * pos_sum + scf_pos
    denominator = numerator + bcf_neg * neg_sum + scf_neg
    aps = numerator / denominator

    # Direct column stores (no concatenate of lane-1 vectors).
    out_ref[:, 0:1] = aps
    out_ref[:, 1:2] = numerator
    out_ref[:, 2:3] = denominator
    out_ref[:, 3:4] = n_valid_pos
    out_ref[:, 4:5] = n_valid_neg


def vec_smooth_ap(anchor_similarities,
                  non_anchor_pos_similarities,
                  non_anchor_neg_similarities,
                  batch,
                  sigmoid_temperature):
    """JAX/Pallas equivalent of VecSmoothAP.forward. Returns (loss, log_dict)."""
    f32 = jnp.float32
    n, p = non_anchor_pos_similarities.shape
    _, q = non_anchor_neg_similarities.shape

    pos_mask = batch['valid_nonanchor_pos_pair_mask']
    neg_mask = batch['valid_nonanchor_neg_pair_mask']

    # Pack the tiny per-anchor vectors into one (N, 5) f32 array (single DMA).
    side = jnp.stack(
        [
            anchor_similarities.astype(f32),
            batch['batch_correction_factor_positive'].astype(f32),
            batch['batch_correction_factor_negative'].astype(f32),
            batch['sampling_correction_factor_positive'].astype(f32),
            batch['sampling_correction_factor_negative'].astype(f32),
        ],
        axis=-1,
    )
    n_total = jnp.asarray(batch['n_total_positive_pairs'], f32).reshape(1)

    # ---- per-generation VMEM sizing ---------------------------------------
    try:
        vmem_cap = int(pltpu.get_tpu_info().vmem_capacity_bytes)
    except Exception:                       # conservative fallback (v7x-safe)
        vmem_cap = 64 << 20
    # Scoped limit we ask the compiler for: 3/4 of physical, capped at 96 MiB.
    vmem_limit = int(min(vmem_cap * 3 // 4, 96 << 20))

    # Streamed bytes per anchor row (inputs, native dtypes).
    input_row_bytes = (
        p * (non_anchor_pos_similarities.dtype.itemsize + pos_mask.dtype.itemsize)
        + q * (non_anchor_neg_similarities.dtype.itemsize + neg_mask.dtype.itemsize)
    )
    # In-kernel f32 intermediates (casts, tanh, masked values): ~3 live f32
    # copies of the (P+Q)-wide row.
    interm_row_bytes = 12 * (p + q)
    # 2x inputs for double buffering + intermediates (+ tiny side/out blocks).
    per_row_vmem = 2 * input_row_bytes + interm_row_bytes + 64

    budget = int(vmem_limit * 0.7)
    rows = budget // max(per_row_vmem, 1)
    rows = max(32, min(2048, (rows // 32) * 32))         # 32-row granularity

    if n <= 32:
        block_n = n                                      # full dim allowed if tiny
    else:
        # At least 2 grid blocks when N is large so v7x's 2 TensorCores both
        # get work under dimension_semantics=("parallel",).
        block_n = min(rows, _round_up(pl.cdiv(n, 2), 32))
    grid = (pl.cdiv(n, block_n),)

    kernel = functools.partial(
        _vec_smooth_ap_kernel,
        half_inv_temp=0.5 / float(sigmoid_temperature))

    out = pl.pallas_call(
        kernel,
        out_shape=jax.ShapeDtypeStruct((n, 5), f32),
        grid=grid,
        in_specs=[
            pl.BlockSpec(memory_space=pltpu.MemorySpace.SMEM),       # n_total
            pl.BlockSpec((block_n, 5), lambda i: (i, 0)),            # packed side
            pl.BlockSpec((block_n, p), lambda i: (i, 0)),            # pos sims
            pl.BlockSpec((block_n, q), lambda i: (i, 0)),            # neg sims
            pl.BlockSpec((block_n, p), lambda i: (i, 0)),            # pos mask
            pl.BlockSpec((block_n, q), lambda i: (i, 0)),            # neg mask
        ],
        out_specs=pl.BlockSpec((block_n, 5), lambda i: (i, 0)),
        compiler_params=pltpu.CompilerParams(
            dimension_semantics=("parallel",),            # megacore sharding
            vmem_limit_bytes=vmem_limit),
    )(n_total, side, non_anchor_pos_similarities, non_anchor_neg_similarities,
      pos_mask, neg_mask)

    aps = out[:, 0]
    numerator = out[:, 1]
    denominator = out[:, 2]
    n_valid_pos = out[:, 3]          # computed in-kernel (masks already in VMEM)
    n_valid_neg = out[:, 4]
    loss = -jnp.mean(aps)            # scalar mean in the wrapper (tiny)

    # TODO(synk): boolean-mask indexing (pos_sim_diffs[mask], raw masked
    # similarities) produces dynamic shapes and has no JAX/Pallas equivalent;
    # those log entries are omitted / logged densely upstream if needed.
    log_data = {
        'anchor_pair_smooth_ap': aps,
        'numerator': numerator,
        'denominator': denominator,
        'batch_correction_factor_positive': batch['batch_correction_factor_positive'],
        'batch_correction_factor_negative': batch['batch_correction_factor_negative'],
        'sampling_correction_factor_positive': batch['sampling_correction_factor_positive'],
        'sampling_correction_factor_negative': batch['sampling_correction_factor_negative'],
        'anchor_similarities': anchor_similarities,
        'n_valid_nonanchor_pos_pairs': n_valid_pos,
        'n_valid_nonanchor_neg_pairs': n_valid_neg,
        'frac_pos_nonanchor_pairs': n_valid_pos / (n_valid_pos + n_valid_neg),
        'n_anchor_pairs': float(n),
    }
    return loss, log_data


def _reference(anchor_sims, pos_sims, neg_sims, batch, temp):
    """Pure-JAX reference mirroring the PyTorch forward, for verification."""
    f32 = jnp.float32
    inv_t = 1.0 / float(temp)
    a = anchor_sims.astype(f32)[:, None]
    pos = jax.nn.sigmoid((pos_sims.astype(f32) - a) * inv_t)
    pos = jnp.where(batch['valid_nonanchor_pos_pair_mask'], pos, 0.0)
    neg = jax.nn.sigmoid((neg_sims.astype(f32) - a) * inv_t)
    neg = jnp.where(batch['valid_nonanchor_neg_pair_mask'], neg, 0.0)
    base = 1.0 / (jnp.asarray(batch['n_total_positive_pairs'], f32) - 1.0)
    num = (base
           + batch['batch_correction_factor_positive'].astype(f32) * pos.sum(-1)
           + batch['sampling_correction_factor_positive'].astype(f32))
    den = (num
           + batch['batch_correction_factor_negative'].astype(f32) * neg.sum(-1)
           + batch['sampling_correction_factor_negative'].astype(f32))
    aps = num / den
    return -aps.mean(), aps, num, den


def _make_inputs(key, n_anchor, n_pos, n_neg):
    keys = jax.random.split(key, 9)
    anchor_sims = jax.random.uniform(
        keys[0], (n_anchor,), jnp.float32, -1.0, 1.0).astype(jnp.bfloat16)
    pos_sims = jax.random.uniform(
        keys[1], (n_anchor, n_pos), jnp.float32, -1.0, 1.0).astype(jnp.bfloat16)
    neg_sims = jax.random.uniform(
        keys[2], (n_anchor, n_neg), jnp.float32, -1.0, 1.0).astype(jnp.bfloat16)
    batch = {
        'valid_nonanchor_pos_pair_mask':
            jax.random.bernoulli(keys[3], 0.8, (n_anchor, n_pos)),
        'valid_nonanchor_neg_pair_mask':
            jax.random.bernoulli(keys[4], 0.8, (n_anchor, n_neg)),
        'batch_correction_factor_positive':
            jax.random.uniform(keys[5], (n_anchor,), jnp.float32, 0.5, 1.5),
        'batch_correction_factor_negative':
            jax.random.uniform(keys[6], (n_anchor,), jnp.float32, 0.5, 1.5),
        'sampling_correction_factor_positive':
            jax.random.uniform(keys[7], (n_anchor,), jnp.float32, 0.0, 0.1),
        'sampling_correction_factor_negative':
            jax.random.uniform(keys[8], (n_anchor,), jnp.float32, 0.0, 0.1),
        'n_total_positive_pairs': jnp.float32(128.0),
    }
    return anchor_sims, pos_sims, neg_sims, batch


def _check(anchor_sims, pos_sims, neg_sims, batch, temp):
    loss, log_data = vec_smooth_ap(anchor_sims, pos_sims, neg_sims, batch, temp)
    jax.block_until_ready(loss)

    ref_loss, ref_aps, ref_num, ref_den = _reference(
        anchor_sims, pos_sims, neg_sims, batch, temp)
    ref_nvp = batch['valid_nonanchor_pos_pair_mask'].sum(-1).astype(jnp.float32)
    ref_nvn = batch['valid_nonanchor_neg_pair_mask'].sum(-1).astype(jnp.float32)

    assert jnp.allclose(loss, ref_loss, atol=1e-5, rtol=1e-4), (loss, ref_loss)
    assert jnp.allclose(log_data['anchor_pair_smooth_ap'], ref_aps,
                        atol=1e-5, rtol=1e-4)
    assert jnp.allclose(log_data['numerator'], ref_num, atol=1e-5, rtol=1e-4)
    assert jnp.allclose(log_data['denominator'], ref_den, atol=1e-5, rtol=1e-4)
    assert jnp.allclose(log_data['n_valid_nonanchor_pos_pairs'], ref_nvp)
    assert jnp.allclose(log_data['n_valid_nonanchor_neg_pairs'], ref_nvn)


if __name__ == "__main__":
    SIGMOID_TEMP = 0.01
    key = jax.random.PRNGKey(0)
    k1, k2 = jax.random.split(key)

    # Small single-block case.
    _check(*_make_inputs(k1, 8, 64, 96), SIGMOID_TEMP)
    # Multi-block case (exercises the grid, megacore split and a partial
    # last block: N=48 -> block_n=32, grid=(2,)).
    _check(*_make_inputs(k2, 48, 64, 96), SIGMOID_TEMP)

    print("KERNEL_OK")
</pallas_src>

<mosaic_0001>
module attributes {stable_mosaic.version = 11 : i64} {
  func.func @_vec_smooth_ap_kernel(%arg0: i32, %arg1: memref<1xf32, #tpu.memory_space<smem>>, %arg2: memref<8x5xf32, #tpu.memory_space<vmem>>, %arg3: memref<8x64xbf16, #tpu.memory_space<vmem>>, %arg4: memref<8x96xbf16, #tpu.memory_space<vmem>>, %arg5: memref<8x64xi32, #tpu.memory_space<vmem>>, %arg6: memref<8x96xi32, #tpu.memory_space<vmem>>, %arg7: memref<8x5xf32, #tpu.memory_space<vmem>>) attributes {dimension_semantics = [#tpu.dimension_semantics<parallel>], iteration_bounds = array<i64: 1>, scalar_prefetch = 0 : i64, scratch_operands = 0 : i64, tpu.core_type = #tpu.core_type<tc>, window_params = [{transform_indices = @transform_0, window_bounds = array<i64: 1>}, {transform_indices = @transform_1, window_bounds = array<i64: 8, 5>}, {transform_indices = @transform_2, window_bounds = array<i64: 8, 64>}, {transform_indices = @transform_3, window_bounds = array<i64: 8, 96>}, {transform_indices = @transform_4, window_bounds = array<i64: 8, 64>}, {transform_indices = @transform_5, window_bounds = array<i64: 8, 96>}, {transform_indices = @transform_6, window_bounds = array<i64: 8, 5>}]} {
    %c0 = arith.constant 0 : index
    %c0_0 = arith.constant 0 : index
    %0 = vector.load %arg2[%c0, %c0_0] : memref<8x5xf32, #tpu.memory_space<vmem>>, vector<8x5xf32>
    %1 = vector.extract_strided_slice %0 {offsets = [0, 0], sizes = [8, 1], strides = [1, 1]} : vector<8x5xf32> to vector<8x1xf32>
    %2 = vector.extract_strided_slice %0 {offsets = [0, 1], sizes = [8, 1], strides = [1, 1]} : vector<8x5xf32> to vector<8x1xf32>
    %3 = vector.extract_strided_slice %0 {offsets = [0, 2], sizes = [8, 1], strides = [1, 1]} : vector<8x5xf32> to vector<8x1xf32>
    %4 = vector.extract_strided_slice %0 {offsets = [0, 3], sizes = [8, 1], strides = [1, 1]} : vector<8x5xf32> to vector<8x1xf32>
    %5 = vector.extract_strided_slice %0 {offsets = [0, 4], sizes = [8, 1], strides = [1, 1]} : vector<8x5xf32> to vector<8x1xf32>
    %c0_1 = arith.constant 0 : index
    %c0_2 = arith.constant 0 : index
    %6 = vector.load %arg5[%c0_1, %c0_2] : memref<8x64xi32, #tpu.memory_space<vmem>>, vector<8x64xi32>
    %cst = arith.constant dense<0> : vector<8x64xi32>
    %7 = arith.cmpi ne, %6, %cst : vector<8x64xi32>
    %c0_3 = arith.constant 0 : index
    %c0_4 = arith.constant 0 : index
    %8 = vector.load %arg6[%c0_3, %c0_4] : memref<8x96xi32, #tpu.memory_space<vmem>>, vector<8x96xi32>
    %cst_5 = arith.constant dense<0> : vector<8x96xi32>
    %9 = arith.cmpi ne, %8, %cst_5 : vector<8x96xi32>
    %c0_6 = arith.constant 0 : index
    %c0_7 = arith.constant 0 : index
    %10 = vector.load %arg3[%c0_6, %c0_7] : memref<8x64xbf16, #tpu.memory_space<vmem>>, vector<8x64xbf16>
    %11 = arith.extf %10 : vector<8x64xbf16> to vector<8x64xf32>
    %c0_8 = arith.constant 0 : index
    %c0_9 = arith.constant 0 : index
    %12 = vector.load %arg4[%c0_8, %c0_9] : memref<8x96xbf16, #tpu.memory_space<vmem>>, vector<8x96xbf16>
    %13 = arith.extf %12 : vector<8x96xbf16> to vector<8x96xf32>
    %14 = vector.broadcast %1 : vector<8x1xf32> to vector<8x64xf32>
    %15 = arith.subf %11, %14 : vector<8x64xf32>
    %cst_10 = arith.constant 5.000000e+01 : f32
    %16 = vector.broadcast %cst_10 : f32 to vector<8x64xf32>
    %17 = arith.mulf %15, %16 : vector<8x64xf32>
    %18 = math.tanh %17 : vector<8x64xf32>
    %cst_11 = arith.constant 0.000000e+00 : f32
    %19 = vector.broadcast %cst_11 : f32 to vector<8x64xf32>
    %20 = arith.select %7, %18, %19 : vector<8x64xi1>, vector<8x64xf32>
    %21 = vector.broadcast %1 : vector<8x1xf32> to vector<8x96xf32>
    %22 = arith.subf %13, %21 : vector<8x96xf32>
    %cst_12 = arith.constant 5.000000e+01 : f32
    %23 = vector.broadcast %cst_12 : f32 to vector<8x96xf32>
    %24 = arith.mulf %22, %23 : vector<8x96xf32>
    %25 = math.tanh %24 : vector<8x96xf32>
    %cst_13 = arith.constant 0.000000e+00 : f32
    %26 = vector.broadcast %cst_13 : f32 to vector<8x96xf32>
    %27 = arith.select %9, %25, %26 : vector<8x96xi1>, vector<8x96xf32>
    %28 = arith.extui %7 : vector<8x64xi1> to vector<8x64xi32>
    %29 = arith.sitofp %28 : vector<8x64xi32> to vector<8x64xf32>
    %cst_14 = arith.constant dense<0.000000e+00> : vector<8xf32>
    %30 = vector.multi_reduction <add>, %29, %cst_14 [1] : vector<8x64xf32> to vector<8xf32>
    %31 = vector.shape_cast %30 : vector<8xf32> to vector<8x1xf32>
    %32 = arith.extui %9 : vector<8x96xi1> to vector<8x96xi32>
    %33 = arith.sitofp %32 : vector<8x96xi32> to vector<8x96xf32>
    %cst_15 = arith.constant dense<0.000000e+00> : vector<8xf32>
    %34 = vector.multi_reduction <add>, %33, %cst_15 [1] : vector<8x96xf32> to vector<8xf32>
    %35 = vector.shape_cast %34 : vector<8xf32> to vector<8x1xf32>
    %cst_16 = arith.constant dense<0.000000e+00> : vector<8xf32>
    %36 = vector.multi_reduction <add>, %20, %cst_16 [1] : vector<8x64xf32> to vector<8xf32>
    %37 = vector.shape_cast %36 : vector<8xf32> to vector<8x1xf32>
    %cst_17 = arith.constant 5.000000e-01 : f32
    %38 = vector.broadcast %cst_17 : f32 to vector<8x1xf32>
    %39 = arith.mulf %38, %37 : vector<8x1xf32>
    %cst_18 = arith.constant 5.000000e-01 : f32
    %40 = vector.broadcast %cst_18 : f32 to vector<8x1xf32>
    %41 = arith.mulf %40, %31 : vector<8x1xf32>
    %42 = arith.addf %39, %41 : vector<8x1xf32>
    %cst_19 = arith.constant dense<0.000000e+00> : vector<8xf32>
    %43 = vector.multi_reduction <add>, %27, %cst_19 [1] : vector<8x96xf32> to vector<8xf32>
    %44 = vector.shape_cast %43 : vector<8xf32> to vector<8x1xf32>
    %cst_20 = arith.constant 5.000000e-01 : f32
    %45 = vector.broadcast %cst_20 : f32 to vector<8x1xf32>
    %46 = arith.mulf %45, %44 : vector<8x1xf32>
    %cst_21 = arith.constant 5.000000e-01 : f32
    %47 = vector.broadcast %cst_21 : f32 to vector<8x1xf32>
    %48 = arith.mulf %47, %35 : vector<8x1xf32>
    %49 = arith.addf %46, %48 : vector<8x1xf32>
    %c0_22 = arith.constant 0 : index
    %50 = memref.load %arg1[%c0_22] : memref<1xf32, #tpu.memory_space<smem>>
    %cst_23 = arith.constant 1.000000e+00 : f32
    %51 = arith.subf %50, %cst_23 : f32
    %cst_24 = arith.constant 1.000000e+00 : f32
    %52 = arith.divf %cst_24, %51 : f32
    %53 = arith.mulf %2, %42 : vector<8x1xf32>
    %54 = vector.broadcast %52 : f32 to vector<8x1xf32>
    %55 = arith.addf %54, %53 : vector<8x1xf32>
    %56 = arith.addf %55, %4 : vector<8x1xf32>
    %57 = arith.mulf %3, %49 : vector<8x1xf32>
    %58 = arith.addf %56, %57 : vector<8x1xf32>
    %59 = arith.addf %58, %5 : vector<8x1xf32>
    %60 = arith.divf %56, %59 : vector<8x1xf32>
    %c0_25 = arith.constant 0 : index
    %c0_26 = arith.constant 0 : index
    %61 = vector.load %arg7[%c0_25, %c0_26] : memref<8x5xf32, #tpu.memory_space<vmem>>, vector<8x1xf32>
    tpu.vector_store %arg7[%c0_25, %c0_26], %60 {strides = array<i32>} : memref<8x5xf32, #tpu.memory_space<vmem>>, vector<8x1xf32>,
    %c0_27 = arith.constant 0 : index
    %c1 = arith.constant 1 : index
    %62 = vector.load %arg7[%c0_27, %c1] : memref<8x5xf32, #tpu.memory_space<vmem>>, vector<8x1xf32>
    tpu.vector_store %arg7[%c0_27, %c1], %56 {strides = array<i32>} : memref<8x5xf32, #tpu.memory_space<vmem>>, vector<8x1xf32>,
    %c0_28 = arith.constant 0 : index
    %c2 = arith.constant 2 : index
    %63 = vector.load %arg7[%c0_28, %c2] : memref<8x5xf32, #tpu.memory_space<vmem>>, vector<8x1xf32>
    tpu.vector_store %arg7[%c0_28, %c2], %59 {strides = array<i32>} : memref<8x5xf32, #tpu.memory_space<vmem>>, vector<8x1xf32>,
    %c0_29 = arith.constant 0 : index
    %c3 = arith.constant 3 : index
    %64 = vector.load %arg7[%c0_29, %c3] : memref<8x5xf32, #tpu.memory_space<vmem>>, vector<8x1xf32>
    tpu.vector_store %arg7[%c0_29, %c3], %31 {strides = array<i32>} : memref<8x5xf32, #tpu.memory_space<vmem>>, vector<8x1xf32>,
    %c0_30 = arith.constant 0 : index
    %c4 = arith.constant 4 : index
    %65 = vector.load %arg7[%c0_30, %c4] : memref<8x5xf32, #tpu.memory_space<vmem>>, vector<8x1xf32>
    tpu.vector_store %arg7[%c0_30, %c4], %35 {strides = array<i32>} : memref<8x5xf32, #tpu.memory_space<vmem>>, vector<8x1xf32>,
    return
  }
  func.func @transform_0(%arg0: i32) -> i32 {
    %c0_i32 = arith.constant 0 : i32
    %c0_i32_0 = arith.constant 0 : i32
    return %c0_i32 : i32
  }
  func.func @transform_1(%arg0: i32) -> (i32, i32) {
    %c0_i32 = arith.constant 0 : i32
    %c0_i32_0 = arith.constant 0 : i32
    return %arg0, %c0_i32 : i32, i32
  }
  func.func @transform_2(%arg0: i32) -> (i32, i32) {
    %c0_i32 = arith.constant 0 : i32
    %c0_i32_0 = arith.constant 0 : i32
    return %arg0, %c0_i32 : i32, i32
  }
  func.func @transform_3(%arg0: i32) -> (i32, i32) {
    %c0_i32 = arith.constant 0 : i32
    %c0_i32_0 = arith.constant 0 : i32
    return %arg0, %c0_i32 : i32, i32
  }
  func.func @transform_4(%arg0: i32) -> (i32, i32) {
    %c0_i32 = arith.constant 0 : i32
    %c0_i32_0 = arith.constant 0 : i32
    return %arg0, %c0_i32 : i32, i32
  }
  func.func @transform_5(%arg0: i32) -> (i32, i32) {
    %c0_i32 = arith.constant 0 : i32
    %c0_i32_0 = arith.constant 0 : i32
    return %arg0, %c0_i32 : i32, i32
  }
  func.func @transform_6(%arg0: i32) -> (i32, i32) {
    %c0_i32 = arith.constant 0 : i32
    %c0_i32_0 = arith.constant 0 : i32
    return %arg0, %c0_i32 : i32, i32
  }
}

</mosaic_0001>

<bundles_post_ra>
// kernel: tpu_custom_call.1
= control target key start
LH: loop header
LB: loop body
LE: loop exit
PB: predicated region body
PF: predicated region fallthrough
CT: control target
= control target key end

     0   :  { %v170_v1 = vmov 0   ;;  %s237_s0 = inlined_call_operand.<no memory space> [shape: f32[1], index: 0, kind: input, shape index: {}]   ;;  %s238_s1 = inlined_call_operand.vmem [shape: f32[8,5], index: 1, kind: input, shape index: {}]   ;;  %s239_s2 = inlined_call_operand.vmem [shape: bf16[8,64], index: 2, kind: input, shape index: {}]   ;;  %s240_s3 = inlined_call_operand.vmem [shape: bf16[8,96], index: 3, kind: input, shape index: {}]   ;;  %s241_s4 = inlined_call_operand.vmem [shape: s32[8,64], index: 4, kind: input, shape index: {}]   ;;  %s242_s5 = inlined_call_operand.vmem [shape: s32[8,96], index: 5, kind: input, shape index: {}]   ;;  %s243_s6 = inlined_call_operand.hbm [shape: f32[8,5], index: 6, kind: output, shape index: {}]  }
   0x1   :  { %v25_v0 = vld [vmem:[%s238_s1] sm:$0xff]  ;;  %139 = vset.pattern.permute.xlu0 %v170_v1 }
   0x2   :  { %12 = vsyncpa [#allocation4], 0  ;;  %36 = vperm.xlu0 %139, %v25_v0   ;;  %v26_v2 = vld [vmem:[%s241_s4] sm:$0xff]  ;;  %vm49_vm0 = vcmask 523264   ;;  %v171_v3 = vmov 0.0   ;;  %vm55_vm3 = vcmask 785408  }
   0x3   :  { %vm27_vm1 = vcmp.ne.s32.totalorder %v26_v2, 0  ;;  %v28_v6 = vld [vmem:[%s242_s5] sm:$0xff]  ;;  %s129_s28 = sadd.f32 -1.0, %s237_s0  ;;  %s172_s29 = smov 126   ;;  %vm99_vm4 = vcmask 7168   ;;  %vm101_vm5 = vcmask 15368  }
   0x4   :  { %v127_v4 = vsel %vm27_vm1, 1.0, %v171_v3  ;;  %vm29_vm2 = vcmp.ne.s32.totalorder %v28_v6, 0  ;;  %v32_v9 = vld [vmem:[%s240_s3] sm:$0xf]  ;;  %s173_s0 = smov 127   ;;  %s175_s8 = smov 1  }
   0x5   :  { %v50_v5 = vsel %vm49_vm0, %v127_v4, 0.0  ;;  %v128_v7 = vsel %vm29_vm2, 1.0, %v171_v3  ;;  %v33_v10 = vunpack.c.l.bf16 %v32_v9  ;;  %v73_v17 = vstv %s129_s28  ;;  %v30_v19 = vld [vmem:[%s239_s2] sm:$0xf]  ;;  %s174_s2 = smov 125   ;;  %s176_s9 = smov [#allocation3]  }
   0x6   :  { %51 = vadd.xlane.f32.xlu1 %v50_v5  ;;  %v56_v8 = vsel %vm55_vm3, %v128_v7, 0.0  ;;  %v31_v20 = vunpack.c.l.bf16 %v30_v19  ;;  %vm107_vm6 = vcmask 23568   ;;  %s119_s10 = sshll.u32 %s176_s9, 4  ;;  %vm109_vm7 = vcmask 31768   ;;  %s120_s10 = int_to_ptr.vmem [resolvable:$true] %s119_s10 }
   0x7   :  { %vm111_vm8 = vcmask 39968   ;;  %s148_s11 = scalar_lea.vmem %s120_s10, 128  ;;  %p153_p1 = scmp.lt.s32.totalorder %s120_s10, %s120_s10 }
   0x8   :  { %p149_p0 = scmp.ne.s32.totalorder %s120_s10, %s148_s11  ;;  %p154_p2 = scmp.lt.s32.totalorder %s148_s11, %s148_s11 }
   0xa   :  { %p155_p3 = por %p154_p2, %p153_p1 }
   0xc   :  { %p156_p4 = pnand %p155_p3, %p149_p0 }
  0x21   :  { %57 = vadd.xlane.f32.xlu0 %v56_v8 }
  0x7d   :  { %v37_v11 = vpop.permute.xlu0 %36 }
  0x7e   :  { %v43_v12 = vsub.f32 %v33_v10, %v37_v11  ;;  %v39_v21 = vsub.f32 %v31_v20, %v37_v11 }
  0x80   :  { %v44_v13 = vmul.f32 50.0, %v43_v12  ;;  %v40_v22 = vmul.f32 50.0, %v39_v21 }
  0x82   :  { %140 = vtanh.f32 %v44_v13 }
  0x83   :  { %142 = vrcp.f32 %v73_v17 }
  0x84   :  { %144 = vtanh.f32 %v40_v22 }
  0x8f   :  { %v141_v14 = vpop.eup %140  ;;  %v52_v26 = vpop.xlane.xlu1 %51 }
  0x90   :  { %v46_v15 = vsel %vm29_vm2, %v141_v14, 0.0  ;;  %v143_v18 = vpop.eup %142  ;;  %v63_v36 = vmul.f32 0.5, %v52_v26 }
  0x91   :  { %v65_v16 = vsel %vm55_vm3, %v46_v15, 0.0  ;;  %130 = vpush %v143_v18  ;;  %v145_v23 = vpop.eup %144 }
  0x92   :  { %66 = vadd.xlane.f32.xlu1 %v65_v16  ;;  %v42_v24 = vsel %vm27_vm1, %v145_v23, 0.0 }
  0x93   :  { %v59_v25 = vsel %vm49_vm0, %v42_v24, 0.0 }
  0xa3   :  { %79 = vrot.lane.b32.xlu1 %v25_v0, %s172_s29 }
  0xaa   :  { %v58_v27 = vpop.xlane.xlu0 %57 }
  0xab   :  { %v69_v28 = vmul.f32 0.5, %v58_v27 }
  0xc2   :  { %s131_s7 = spop %130 }
  0xc3   :  { %v77_v39 = vstv %s131_s7 }
  0xc7   :  { %60 = vadd.xlane.f32.xlu1 %v59_v25 }
 0x11b   :  { %v67_v29 = vpop.xlane.xlu1 %66 }
 0x11c   :  { %v68_v30 = vmul.f32 0.5, %v67_v29 }
 0x11e   :  { %v70_v31 = vadd.f32 %v69_v28, %v68_v30 }
 0x11f   :  { %v80_v33 = vpop.permute.xlu1 %79 }
 0x120   :  { %v83_v32 = vmul.f32 %v70_v31, %v25_v0 }
 0x122   :  { %85 = vrot.lane.b32.xlu1 %v83_v32, %s173_s0 }
 0x126   :  { %89 = vrot.lane.b32.xlu1 %v25_v0, %s174_s2 }
 0x150   :  { %v61_v34 = vpop.xlane.xlu1 %60 }
 0x151   :  { %v62_v35 = vmul.f32 0.5, %v61_v34 }
 0x153   :  { %v64_v37 = vadd.f32 %v63_v36, %v62_v35 }
 0x155   :  { %v76_v38 = vmul.f32 %v64_v37, %v25_v0 }
 0x157   :  { %v78_v40 = vadd.f32 %v77_v39, %v76_v38 }
 0x159   :  { %v82_v42 = vadd.f32 %v80_v33, %v78_v40 }
 0x194   :  { %v86_v41 = vpop.permute.xlu1 %85 }
 0x195   :  { %v88_v43 = vadd.f32 %v86_v41, %v82_v42 }
 0x198   :  { %v90_v44 = vpop.permute.xlu1 %89 }
 0x199   :  { %v92_v45 = vadd.f32 %v90_v44, %v88_v43 }
 0x19b   :  { %146 = vrcp.f32 %v92_v45  ;;  %104 = vrot.lane.b32.xlu1 %v92_v45, %s175_s8 }
 0x1a8   :  { %v147_v46 = vpop.eup %146 }
 0x1a9   :  { %v94_v47 = vmul.f32 %v147_v46, %v82_v42 }
 0x1ab   :  { %96 = vrot.lane.b32.xlu0 %v94_v47, %s173_s0 }
 0x20d   :  { %v105_v49 = vpop.permute.xlu1 %104 }
 0x21d   :  { %v97_v48 = vpop.permute.xlu0 %96 }
 0x21e   :  { %100 = vst.msk [vmem:[#allocation3] sm:$0xff] %vm99_vm4, %v97_v48 }
 0x21f   :  { %102 = vst.msk [vmem:[#allocation3] sm:$0xff] %vm101_vm5, %v82_v42 }
 0x220   :  { %108 = vst.msk [vmem:[#allocation3] sm:$0xff] %vm107_vm6, %v105_v49 }
 0x221   :  { %110 = vst.msk [vmem:[#allocation3] sm:$0xff] %vm109_vm7, %v52_v26 }
 0x222   :  { %112 = vst.msk [vmem:[#allocation3] sm:$0xff] %vm111_vm8, %v58_v27 }
 0x223   :  { %159 = shalt.err (!%p156_p4)
}
 0x224   :  { %122 = dma.vmem_to_hbm [thread:$0]  %s120_s10, 128, %s243_s6, [#allocation4]  }
 0x225   :  { %168 = dma.done.wait [#allocation4], 128  }
 0x226   :  { %169 = vsyncadd [#allocation4], 4294967168 }
 0x227   :  { %126 = vsyncpa [#allocation4], 1 }

</bundles_post_ra>
